<compile_context>
chip_gen: v6e
topology: v6e:2x2x1
jax: 0.10.0
libtpu: 0.0.40
codegen_flags: <defaults>
</compile_context>

<pallas_src>
from dataclasses import dataclass

import jax
import jax.numpy as jnp
from jax.experimental import pallas as pl
from jax.experimental.pallas import tpu as pltpu


def _round_up(x: int, m: int) -> int:
    return ((x + m - 1) // m) * m


# ----------------------------------------------------------------------------
# Pallas kernel: fused per-pixel head, transposed (pixels on the lane axis)
#   out^T = W2^T @ relu(W1^T @ X^T + b1) + b2
# x tile: (C_in, TM); W1^T: (D, C_in); b1: (D, 1); W2^T: (K, D); b2: (K, 1)
# out tile: (K, TM)  -> lane-dense stores (TM is a multiple of 128).
# ----------------------------------------------------------------------------
def _seg_head_kernel(x_ref, w1t_ref, b1_ref, w2t_ref, b2_ref, out_ref):
    # The C_in=4 / D=32 contractions leave the MXU mostly idle; the kernel is
    # HBM-bound, so MXU shape tuning is intentionally skipped (per review).
    # TODO(synk): on v5e, if a bundle dump shows vst saturation, cast h to
    # bf16 before the second dot to halve the VMEM spill traffic.
    hp = jax.lax.Precision.HIGHEST
    h = jnp.dot(w1t_ref[...], x_ref[...],
                preferred_element_type=jnp.float32, precision=hp)      # (D, TM)
    h = jnp.maximum(h + b1_ref[...], 0.0)                              # ReLU, bias bcast over lanes
    o = jnp.dot(w2t_ref[...], h,
                preferred_element_type=jnp.float32, precision=hp)      # (K, TM)
    o = o + b2_ref[...]
    out_ref[...] = o.astype(out_ref.dtype)


def seg_head_pallas(x_ncm, w1t, b1, w2t, b2, *, tile_m=32768,
                    out_dtype=jnp.bfloat16):
    """x_ncm: (N, C_in, M) activations (M = H*W on the lane axis).

    Returns logits of shape (N, K, M) in `out_dtype` (default bfloat16 to
    halve the dominant writeback stream; MXU accumulation stays f32).
    """
    n, c_in, m = x_ncm.shape
    d = w1t.shape[0]
    k = w2t.shape[0]
    out_dtype = jnp.dtype(out_dtype)

    # Lane-axis tile: multiple of 128, no larger than the (128-padded) image.
    tm = _round_up(min(tile_m, _round_up(m, 128)), 128)

    # Megacore guard: keep >= 2 total grid steps so both TensorCores (v7x)
    # get work under ("parallel", "parallel"); only possible when m > 128.
    if n * pl.cdiv(m, tm) < 2 and m > 128:
        tm = _round_up(pl.cdiv(m, 2), 128)

    grid = (n, pl.cdiv(m, tm))

    # Per-step VMEM footprint (double-buffered I/O tiles + f32 intermediate
    # + weights).  Explicit limit covers v5e's 16 MiB default scoped VMEM at
    # tm=32768 and stays well under v7x's 64 MiB physical VMEM.
    # TODO(synk): when the real encoder lands (C_in ~256-2048), re-derive tm
    # against v7x's 64 MiB physical VMEM (not v6e's 128 MiB).
    x_bytes = jnp.dtype(x_ncm.dtype).itemsize
    o_bytes = out_dtype.itemsize
    w_bytes = (d * c_in + d + k * d + k) * 4
    step_bytes = 2 * (c_in * tm * x_bytes + k * tm * o_bytes) + 4 * d * tm * 4 + w_bytes
    vmem_limit = min(max(int(step_bytes * 1.5), 32 << 20), 96 << 20)

    cost = pl.CostEstimate(
        flops=2 * n * m * (c_in * d + d * k),
        transcendentals=0,
        bytes_accessed=n * m * (c_in * x_bytes + k * o_bytes) + w_bytes,
    )

    out = pl.pallas_call(
        _seg_head_kernel,
        out_shape=jax.ShapeDtypeStruct((n, k, m), out_dtype),
        grid_spec=pltpu.PrefetchScalarGridSpec(
            num_scalar_prefetch=0,
            grid=grid,
            in_specs=[
                pl.BlockSpec((None, c_in, tm), lambda i, j: (i, 0, j)),  # X^T tile
                pl.BlockSpec((d, c_in), lambda i, j: (0, 0)),            # W1^T (full)
                pl.BlockSpec((d, 1), lambda i, j: (0, 0)),               # b1
                pl.BlockSpec((k, d), lambda i, j: (0, 0)),               # W2^T (full)
                pl.BlockSpec((k, 1), lambda i, j: (0, 0)),               # b2
            ],
            out_specs=pl.BlockSpec((None, k, tm), lambda i, j: (i, 0, j)),
        ),
        compiler_params=pltpu.CompilerParams(
            dimension_semantics=("parallel", "parallel"),
            vmem_limit_bytes=vmem_limit,
        ),
        cost_estimate=cost,
    )(x_ncm, w1t, b1, w2t, b2)
    return out


# ----------------------------------------------------------------------------
# Module-level wrapper mirroring BaseSegNet's __init__ contract
# ----------------------------------------------------------------------------
@dataclass
class Opt:
    intermediate_dim: int = 32
    prototype_len: int = 8
    include_void: bool = True


class BaseSegNetPallas:
    def __init__(self, opt: Opt, num_known_classes: int, in_channels: int, key):
        self.opt = opt
        self.intermediate_dim = opt.intermediate_dim
        self.prototype_len = opt.prototype_len  # reserved for prototype heads
        self.num_known_classes = num_known_classes
        self.num_output_classes = (
            num_known_classes + 1 if opt.include_void else num_known_classes
        )
        # TODO(synk): encoder/decoder are abstract (None) in the PyTorch base
        # class; only the implied per-pixel segmentation head is implemented.
        k1, k2, k3, k4 = jax.random.split(key, 4)
        # Weights stored pre-transposed for the lane-major kernel layout.
        self.w1t = jax.random.normal(
            k1, (self.intermediate_dim, in_channels), jnp.float32) * 0.1   # W1^T
        self.b1 = jax.random.normal(
            k2, (self.intermediate_dim, 1), jnp.float32) * 0.01
        self.w2t = jax.random.normal(
            k3, (self.num_output_classes, self.intermediate_dim), jnp.float32) * 0.1  # W2^T
        self.b2 = jax.random.normal(
            k4, (self.num_output_classes, 1), jnp.float32) * 0.01

    def get_seg_masks(self, x_nchw, *, out_dtype=jnp.bfloat16):
        """x_nchw: (N, C, H, W) -> logits (N, num_output_classes, H, W).

        Consumes NCHW directly (pixels flattened onto the lane axis); no
        NHWC transposes.  Default bf16 logits; pass out_dtype=jnp.float32 for
        full-precision writeback.
        TODO(synk): have the (future) encoder emit bf16 activations so the
        input stream also halves — do NOT add an astype here (extra HBM trip).
        """
        n, c, h, w = x_nchw.shape
        x_ncm = x_nchw.reshape(n, c, h * w)          # free trailing-dim merge
        logits = seg_head_pallas(x_ncm, self.w1t, self.b1, self.w2t, self.b2,
                                 out_dtype=out_dtype)
        return logits.reshape(n, self.num_output_classes, h, w)

    def forward(self, x_nchw):
        # TODO(synk): base-class forward() literally returns NotImplementedError;
        # we route through the concrete seg-head kernel instead.
        return self.get_seg_masks(x_nchw)


def _reference(x_nchw, w1t, b1, w2t, b2):
    hp = jax.lax.Precision.HIGHEST
    h = jnp.einsum("dc,nchw->ndhw", w1t, x_nchw,
                   precision=hp) + b1[:, 0][None, :, None, None]
    h = jnp.maximum(h, 0.0)
    o = jnp.einsum("kd,ndhw->nkhw", w2t, h,
                   precision=hp) + b2[:, 0][None, :, None, None]
    return o


if __name__ == "__main__":
    key = jax.random.PRNGKey(0)
    k_in, k_in2, k_in3, k_params = jax.random.split(key, 4)

    opt = Opt(intermediate_dim=32, prototype_len=8, include_void=True)
    num_known_classes = 4
    batch, channels, spatial = 2, 4, 16

    model = BaseSegNetPallas(opt, num_known_classes, in_channels=channels,
                             key=k_params)
    x = jax.random.normal(k_in, (batch, channels, spatial, spatial), jnp.float32)
    ref = _reference(x, model.w1t, model.b1, model.w2t, model.b2)

    # Default path: bf16 logits (reduced HBM writeback), loose tolerance.
    out = jax.block_until_ready(model.forward(x))
    assert out.shape == (batch, model.num_output_classes, spatial, spatial), out.shape
    assert out.dtype == jnp.bfloat16, out.dtype
    assert jnp.allclose(out.astype(jnp.float32), ref, atol=5e-2, rtol=5e-2), \
        "bf16 mismatch vs reference"

    # Full-precision path: tight tolerance.
    out_f32 = jax.block_until_ready(
        model.get_seg_masks(x, out_dtype=jnp.float32))
    assert out_f32.dtype == jnp.float32
    assert jnp.allclose(out_f32, ref, atol=1e-4, rtol=1e-4), \
        "f32 mismatch vs reference"

    # Non-128-aligned spatial size exercises the ragged last block (no HBM
    # pad, no output slice).
    x2 = jax.random.normal(k_in2, (batch, channels, 10, 10), jnp.float32)
    out2 = jax.block_until_ready(model.get_seg_masks(x2, out_dtype=jnp.float32))
    ref2 = _reference(x2, model.w1t, model.b1, model.w2t, model.b2)
    assert out2.shape == (batch, model.num_output_classes, 10, 10), out2.shape
    assert jnp.allclose(out2, ref2, atol=1e-4, rtol=1e-4), "ragged-tail mismatch"

    # N=1 exercises the megacore guard (tm shrinks so grid has >= 2 steps).
    x3 = jax.random.normal(k_in3, (1, channels, spatial, spatial), jnp.float32)
    out3 = jax.block_until_ready(model.get_seg_masks(x3, out_dtype=jnp.float32))
    ref3 = _reference(x3, model.w1t, model.b1, model.w2t, model.b2)
    assert jnp.allclose(out3, ref3, atol=1e-4, rtol=1e-4), "n=1 path mismatch"

    print("KERNEL_OK")
</pallas_src>

<mosaic_0001>
module attributes {stable_mosaic.version = 11 : i64} {
  func.func @_seg_head_kernel(%arg0: i32, %arg1: i32, %arg2: memref<1x4x256xf32, #tpu.memory_space<vmem>>, %arg3: memref<32x4xf32, #tpu.memory_space<vmem>>, %arg4: memref<32x1xf32, #tpu.memory_space<vmem>>, %arg5: memref<5x32xf32, #tpu.memory_space<vmem>>, %arg6: memref<5x1xf32, #tpu.memory_space<vmem>>, %arg7: memref<1x5x256xbf16, #tpu.memory_space<vmem>>) attributes {dimension_semantics = [#tpu.dimension_semantics<parallel>, #tpu.dimension_semantics<parallel>], iteration_bounds = array<i64: 2, 1>, scalar_prefetch = 0 : i64, scratch_operands = 0 : i64, tpu.core_type = #tpu.core_type<tc>, window_params = [{transform_indices = @transform_0, window_bounds = array<i64: 1, 4, 256>}, {pipeline_mode = #tpu.pipeline_mode<synchronous>, transform_indices = @transform_1, window_bounds = array<i64: 32, 4>}, {pipeline_mode = #tpu.pipeline_mode<synchronous>, transform_indices = @transform_2, window_bounds = array<i64: 32, 1>}, {pipeline_mode = #tpu.pipeline_mode<synchronous>, transform_indices = @transform_3, window_bounds = array<i64: 5, 32>}, {pipeline_mode = #tpu.pipeline_mode<synchronous>, transform_indices = @transform_4, window_bounds = array<i64: 5, 1>}, {transform_indices = @transform_5, window_bounds = array<i64: 1, 5, 256>}]} {
    %c0 = arith.constant 0 : index
    %c0_0 = arith.constant 0 : index
    %0 = vector.load %arg3[%c0, %c0_0] : memref<32x4xf32, #tpu.memory_space<vmem>>, vector<32x4xf32>
    %c0_1 = arith.constant 0 : index
    %c0_2 = arith.constant 0 : index
    %c0_3 = arith.constant 0 : index
    %1 = vector.load %arg2[%c0_1, %c0_2, %c0_3] : memref<1x4x256xf32, #tpu.memory_space<vmem>>, vector<1x4x256xf32>
    %2 = vector.shape_cast %1 : vector<1x4x256xf32> to vector<4x256xf32>
    %cst = arith.constant dense<0.000000e+00> : vector<32x256xf32>
    %3 = tpu.matmul %0, %2, %cst {dimension_numbers = #tpu.dot_dimension_numbers<[1], [0], [0], [1], [0, 0, 1, 1], [], []>, precision = #tpu.contract_precision<fp32>} : vector<32x4xf32>, vector<4x256xf32>, vector<32x256xf32> -> vector<32x256xf32>
    %c0_4 = arith.constant 0 : index
    %c0_5 = arith.constant 0 : index
    %4 = vector.load %arg4[%c0_4, %c0_5] : memref<32x1xf32, #tpu.memory_space<vmem>>, vector<32x1xf32>
    %5 = vector.broadcast %4 : vector<32x1xf32> to vector<32x256xf32>
    %6 = arith.addf %3, %5 : vector<32x256xf32>
    %cst_6 = arith.constant 0.000000e+00 : f32
    %7 = vector.broadcast %cst_6 : f32 to vector<32x256xf32>
    %8 = arith.maximumf %6, %7 : vector<32x256xf32>
    %c0_7 = arith.constant 0 : index
    %c0_8 = arith.constant 0 : index
    %9 = vector.load %arg5[%c0_7, %c0_8] : memref<5x32xf32, #tpu.memory_space<vmem>>, vector<5x32xf32>
    %cst_9 = arith.constant dense<0.000000e+00> : vector<5x256xf32>
    %10 = tpu.matmul %9, %8, %cst_9 {dimension_numbers = #tpu.dot_dimension_numbers<[1], [0], [0], [1], [0, 0, 1, 1], [], []>, precision = #tpu.contract_precision<fp32>} : vector<5x32xf32>, vector<32x256xf32>, vector<5x256xf32> -> vector<5x256xf32>
    %c0_10 = arith.constant 0 : index
    %c0_11 = arith.constant 0 : index
    %11 = vector.load %arg6[%c0_10, %c0_11] : memref<5x1xf32, #tpu.memory_space<vmem>>, vector<5x1xf32>
    %12 = vector.broadcast %11 : vector<5x1xf32> to vector<5x256xf32>
    %13 = arith.addf %10, %12 : vector<5x256xf32>
    %14 = arith.truncf %13 : vector<5x256xf32> to vector<5x256xbf16>
    %c0_12 = arith.constant 0 : index
    %c0_13 = arith.constant 0 : index
    %c0_14 = arith.constant 0 : index
    %15 = vector.load %arg7[%c0_12, %c0_13, %c0_14] : memref<1x5x256xbf16, #tpu.memory_space<vmem>>, vector<1x5x256xbf16>
    %16 = vector.shape_cast %15 : vector<1x5x256xbf16> to vector<5x256xbf16>
    %17 = vector.shape_cast %14 : vector<5x256xbf16> to vector<1x5x256xbf16>
    tpu.vector_store %arg7[%c0_12, %c0_13, %c0_14], %17 {strides = array<i32>} : memref<1x5x256xbf16, #tpu.memory_space<vmem>>, vector<1x5x256xbf16>,
    return
  }
  func.func @transform_0(%arg0: i32, %arg1: i32) -> (i32, i32, i32) {
    %c0_i32 = arith.constant 0 : i32
    %c0_i32_0 = arith.constant 0 : i32
    return %arg0, %c0_i32, %arg1 : i32, i32, i32
  }
  func.func @transform_1(%arg0: i32, %arg1: i32) -> (i32, i32) {
    %c0_i32 = arith.constant 0 : i32
    %c0_i32_0 = arith.constant 0 : i32
    %c0_i32_1 = arith.constant 0 : i32
    return %c0_i32, %c0_i32_0 : i32, i32
  }
  func.func @transform_2(%arg0: i32, %arg1: i32) -> (i32, i32) {
    %c0_i32 = arith.constant 0 : i32
    %c0_i32_0 = arith.constant 0 : i32
    %c0_i32_1 = arith.constant 0 : i32
    return %c0_i32, %c0_i32_0 : i32, i32
  }
  func.func @transform_3(%arg0: i32, %arg1: i32) -> (i32, i32) {
    %c0_i32 = arith.constant 0 : i32
    %c0_i32_0 = arith.constant 0 : i32
    %c0_i32_1 = arith.constant 0 : i32
    return %c0_i32, %c0_i32_0 : i32, i32
  }
  func.func @transform_4(%arg0: i32, %arg1: i32) -> (i32, i32) {
    %c0_i32 = arith.constant 0 : i32
    %c0_i32_0 = arith.constant 0 : i32
    %c0_i32_1 = arith.constant 0 : i32
    return %c0_i32, %c0_i32_0 : i32, i32
  }
  func.func @transform_5(%arg0: i32, %arg1: i32) -> (i32, i32, i32) {
    %c0_i32 = arith.constant 0 : i32
    %c0_i32_0 = arith.constant 0 : i32
    return %arg0, %c0_i32, %arg1 : i32, i32, i32
  }
}

</mosaic_0001>

<bundles_post_ra>
// kernel: tpu_custom_call.1
= control target key start
LH: loop header
LB: loop body
LE: loop exit
PB: predicated region body
PF: predicated region fallthrough
CT: control target
= control target key end

     0   :  { %s1692_s18 = smov 0   ;;  %s1694_s19 = smov 0   ;;  %s1944_s0 = inlined_call_operand.vmem [shape: f32[2,4,256], index: 0, kind: input, shape index: {}]   ;;  %s1945_s1 = inlined_call_operand.vmem [shape: f32[32,4], index: 1, kind: input, shape index: {}]   ;;  %s1946_s2 = inlined_call_operand.vmem [shape: f32[32,1], index: 2, kind: input, shape index: {}]   ;;  %s1947_s3 = inlined_call_operand.vmem [shape: f32[5,32], index: 3, kind: input, shape index: {}]   ;;  %s1948_s4 = inlined_call_operand.vmem [shape: f32[5,1], index: 4, kind: input, shape index: {}]   ;;  %s1949_s5 = inlined_call_operand.vmem [shape: bf16[2,5,256], index: 5, kind: output, shape index: {}]  }
   0x1   :  { %s1696_s20 = smov 0  }
   0x2 LB: > { %s27_s21 = sadd.s32 1, %s1654_s19  ;;  %p1596_p0 = scmp.ge.s32.totalorder %s1658_s20, 1  ;;  %s1658_s20 = sphi %s1696_s20, %s15_s20   ;;  %s1654_s19 = sphi %s1694_s19, %s1951_s19   ;;  %s1650_s18 = sphi %s1692_s18, %s1950_s18  }
   0x3   : > { %p29_p1 = scmp.ge.s32.totalorder %s27_s21, 2  ;;  %p208_p2 = scmp.lt.s32.totalorder %s1658_s20, 3 }
   0x5   : > { %s1953_s21 = smov (%p29_p1, %s27_s21), 0  ;;  %p209_p3 = pnand %p1596_p0, %p208_p2 }
   0x6   : > { %p245_p4 = scmp.lt.s32.totalorder (!%p209_p3), %s1650_s18, 1 }
   0x7   : > { %212 = sbr.rel (%p209_p3) target bundleno = 513 (0x201), region = 40 }
   0xc   : > { %v264_v0 = vld [vmem:[%s1945_s1] sm:$0xff]  ;;  %vm295_vm0 = vcmask 31744   ;;  %v265_v1 = vld [vmem:[%s1945_s1 + $0x8] sm:$0xff]  ;;  %v1660_v2 = vmov 0.0   ;;  %v266_v5 = vld [vmem:[%s1945_s1 + $0x10] sm:$0xff]  ;;  %s1955_s18 = smov (!%p245_p4, %s1650_s18), 1 }
   0xd   : > { %379 = vmatprep.mubr.f32.mxu0 %v1660_v2  ;;  %v297_v3 = vsel %vm295_vm0, %v264_v0, 0  ;;  %v300_v4 = vsel %vm295_vm0, %v265_v1, 0  ;;  %498 = vmatprep.mubr.f32.mxu1 %v1660_v2  ;;  %v267_v6 = vld [vmem:[%s1945_s1 + $0x18] sm:$0xff]  ;;  %v270_v7 = vld [vmem:[%s1946_s2 + $0x8] sm:$0xff]  ;;  %v303_v10 = vsel %vm295_vm0, %v266_v5, 0  ;;  %v1661_v12 = vmov 0  }
   0xe   : > { %v1729_v8 = vand.u32 4294901760, %v297_v3  ;;  %v1731_v9 = vand.u32 4294901760, %v300_v4  ;;  %v306_v11 = vsel %vm295_vm0, %v267_v6, 0  ;;  %1634 = vset.pattern.permute.xlu1 %v1661_v12  ;;  %1633 = vset.pattern.permute.xlu0 %v1661_v12  ;;  %v1733_v13 = vand.u32 4294901760, %v303_v10  ;;  %v272_v14 = vld [vmem:[%s1946_s2 + $0x18] sm:$0xff]  ;;  %s1604_s9 = sshll.u32 %s1955_s18, 3 }
   0xf   : > { %280 = vperm.xlu1 %1634, %v270_v7   ;;  %vm308_vm1 = vcmask 1043456   ;;  %v269_v17 = vld [vmem:[%s1946_s2] sm:$0xff]  ;;  %290 = vperm.xlu0 %1633, %v272_v14   ;;  %s252_s14 = scalar_lea.vmem %s1944_s0, %s1604_s9  ;;  %v1756_v19 = vand.u32 4294901760, %v306_v11  ;;  %v271_v20 = vld [vmem:[%s1946_s2 + $0x10] sm:$0xff]  ;;  %vm940_vm2 = vcmask 261120   ;;  %vm1495_vm3 = vcmask 1042432   ;;  %s262_s27 = scalar_lea.vmem %s1949_s5, %s1604_s9 }
  0x10   : > { %v1740_v15 = vsub.f32 %v297_v3, %v1729_v8  ;;  %v1743_v16 = vsub.f32 %v300_v4, %v1731_v9  ;;  %v1754_v18 = vsub.f32 %v303_v10, %v1733_v13  ;;  %v268_v21 = vld [vmem:[%s252_s14] sm:$0xff]  ;;  %vm1496_vm4 = vsmask.f32 2304 }
  0x11   : > { %v294_v24 = vcombine.high %v268_v21, %v268_v21  ;;  %v309_v25 = vsel %vm308_vm1, %v268_v21, 0  ;;  %v1768_v30 = vsub.f32 %v306_v11, %v1756_v19  ;;  %v934_v31 = vld [vmem:[%s1948_s4] sm:$0x1f]  ;;  %vm1498_vm5 = vcmask 1046532   ;;  %vm1497_vm7 = vmand %vm1495_vm3, %vm1496_vm4 }
  0x12   : > { %v382_v22 = vand.u32 4294901760, %v1740_v15  ;;  %v393_v23 = vand.u32 4294901760, %v1743_v16  ;;  %v345_v26 = vand.u32 4294901760, %v309_v25  ;;  %v404_v29 = vand.u32 4294901760, %v1754_v18 }
  0x13   : > { %275 = vperm.xlu1 %1634, %v269_v17   ;;  %285 = vperm.xlu0 %1633, %v271_v20   ;;  %v311_v28 = vsel %vm308_vm1, %v294_v24, 0  ;;  %v415_v38 = vand.u32 4294901760, %v1768_v30  ;;  %vm1499_vm6 = vsmask.f32 6400 }
  0x14   : > { %v383_v27 = vsub.f32 %v1740_v15, %v382_v22  ;;  %v343_v32 = vand.u32 4294901760, %v311_v28  ;;  %v394_v34 = vsub.f32 %v1743_v16, %v393_v23  ;;  %v461_v35 = vsub.f32 %v309_v25, %v345_v26  ;;  %vm1500_vm8 = vmand %vm1498_vm5, %vm1499_vm6 }
  0x15   : > { %v405_v42 = vsub.f32 %v1754_v18, %v404_v29  ;;  %v416_v47 = vsub.f32 %v1768_v30, %v415_v38  ;;  %vm1501_vm9 = vmor %vm1500_vm8, %vm1497_vm7 }
  0x16   : > { %v384_v33 = vand.u32 4294901760, %v383_v27  ;;  %344 = vmatprep.subr.mxu0 %v343_v32  ;;  %v455_v36 = vsub.f32 %v311_v28, %v343_v32  ;;  %v462_v37 = vand.u32 4294901760, %v461_v35  ;;  %v395_v39 = vand.u32 4294901760, %v394_v34 }
  0x17   : > { %937 = vperm.xlu0 %1633, %v934_v31   ;;  %346 = vmatpush1.msra.mxu0 %v345_v26  ;;  %v406_v46 = vand.u32 4294901760, %v405_v42  ;;  %v417_v48 = vand.u32 4294901760, %v416_v47 }
  0x18   : > { %385 = vmatmul.mubr.f32.vlgmr.msra.gmra.mxu0 %v384_v33  ;;  %v456_v40 = vand.u32 4294901760, %v455_v36  ;;  %v463_v41 = vsub.f32 %v461_v35, %v462_v37  ;;  %559 = vmatprep.subr.mxu0 %v455_v36 }
  0x19   : > { %390 = vmatprep.mubr.f32.mxu0 %v1660_v2  ;;  %562 = vmatpush1.msra.mxu0 %v461_v35 }
  0x1a   : > { %v457_v43 = vsub.f32 %v455_v36, %v456_v40  ;;  %764 = vmatprep.subr.mxu0 %v456_v40  ;;  %v464_v44 = vand.u32 4294901760, %v463_v41 }
  0x1c   : > { %396 = vmatmul.mubr.f32.gmra.mxu0 %v395_v39  ;;  %v458_v45 = vand.u32 4294901760, %v457_v43 }
  0x1d   : > { %401 = vmatprep.mubr.f32.mxu0 %v1660_v2 }
  0x1e   : > { %459 = vmatprep.subr.mxu1 %v458_v45 }
  0x1f   : > { %465 = vmatpush1.msra.mxu1 %v464_v44 }
  0x20   : > { %407 = vmatmul.mubr.f32.gmra.mxu0 %v406_v46  ;;  %500 = vmatmul.mubr.f32.vlgmr.msra.gmra.mxu1 %v1729_v8 }
  0x21   : > { %412 = vmatprep.mubr.f32.mxu0 %v1660_v2  ;;  %505 = vmatprep.mubr.f32.mxu1 %v1660_v2 }
  0x22   : > { %659 = vmatprep.subr.mxu1 %v343_v32 }
  0x23   : > { %661 = vmatpush1.msra.mxu1 %v345_v26 }
  0x24   : > { %418 = vmatmul.mubr.f32.gmra.mxu0 %v417_v48  ;;  %507 = vmatmul.mubr.f32.gmra.mxu1 %v1731_v9 }
  0x25   : > { %512 = vmatprep.mubr.f32.mxu1 %v1660_v2  ;;  %595 = vmatprep.mubr.f32.mxu0 %v1660_v2 }
  0x26   : > { %861 = vmatprep.subr.mxu1 %v343_v32 }
  0x28   : > { %514 = vmatmul.mubr.f32.gmra.mxu1 %v1733_v13  ;;  %598 = vmatmul.mubr.f32.vlgmr.msra.gmra.mxu0 %v1740_v15 }
  0x29   : > { %519 = vmatprep.mubr.f32.mxu1 %v1660_v2  ;;  %603 = vmatprep.mubr.f32.mxu0 %v1660_v2 }
  0x2a   : > { %768 = vmatpush1.msra.mxu0 %v462_v37 }
  0x2c   : > { %521 = vmatmul.mubr.f32.gmra.mxu1 %v1756_v19  ;;  %606 = vmatmul.mubr.f32.gmra.mxu0 %v1743_v16 }
  0x2d   : > { %611 = vmatprep.mubr.f32.mxu0 %v1660_v2  ;;  %694 = vmatprep.mubr.f32.mxu1 %v1660_v2 }
  0x30   : > { %614 = vmatmul.mubr.f32.gmra.mxu0 %v1754_v18  ;;  %698 = vmatmul.mubr.f32.vlgmr.msra.gmra.mxu1 %v382_v22 }
  0x31   : > { %619 = vmatprep.mubr.f32.mxu0 %v1660_v2  ;;  %703 = vmatprep.mubr.f32.mxu1 %v1660_v2 }
  0x32   : > { %863 = vmatpush1.msra.mxu1 %v345_v26 }
  0x34   : > { %622 = vmatmul.mubr.f32.gmra.mxu0 %v1768_v30  ;;  %707 = vmatmul.mubr.f32.gmra.mxu1 %v393_v23 }
  0x35   : > { %712 = vmatprep.mubr.f32.mxu1 %v1660_v2  ;;  %801 = vmatprep.mubr.f32.mxu0 %v1660_v2 }
  0x38   : > { %716 = vmatmul.mubr.f32.gmra.mxu1 %v404_v29  ;;  %803 = vmatmul.mubr.f32.vlgmr.msra.gmra.mxu0 %v1729_v8 }
  0x39   : > { %721 = vmatprep.mubr.f32.mxu1 %v1660_v2  ;;  %808 = vmatprep.mubr.f32.mxu0 %v1660_v2 }
  0x3c   : > { %725 = vmatmul.mubr.f32.gmra.mxu1 %v415_v38  ;;  %810 = vmatmul.mubr.f32.gmra.mxu0 %v1731_v9  ;;  %v933_v38 = vld [vmem:[%s1947_s3] sm:$0x1f] }
  0x3d   : > { %815 = vmatprep.mubr.f32.mxu0 %v1660_v2  ;;  %896 = vmatprep.mubr.f32.mxu1 %v1660_v2 }
  0x40   : > { %817 = vmatmul.mubr.f32.gmra.mxu0 %v1733_v13  ;;  %898 = vmatmul.mubr.f32.vlgmr.msra.gmra.mxu1 %v1729_v8 }
  0x41   : > { %822 = vmatprep.mubr.f32.mxu0 %v1660_v2  ;;  %903 = vmatprep.mubr.f32.mxu1 %v1660_v2 }
  0x44   : > { %824 = vmatmul.mubr.f32.gmra.mxu0 %v1756_v19  ;;  %905 = vmatmul.mubr.f32.gmra.mxu1 %v1731_v9 }
  0x45   : > { %910 = vmatprep.mubr.f32.mxu1 %v1660_v2  ;;  %1016 = vmatprep.mubr.f32.mxu0 %v1660_v2 }
  0x48   : > { %912 = vmatmul.mubr.f32.gmra.mxu1 %v1733_v13 }
  0x49   : > { %917 = vmatprep.mubr.f32.mxu1 %v1660_v2 }
  0x4c   : > { %919 = vmatmul.mubr.f32.gmra.mxu1 %v1756_v19 }
  0x4d   : > { %1132 = vmatprep.mubr.f32.mxu1 %v1660_v2 }
  0x8a   : > { %v291_v10 = vpop.permute.xlu0 %290  ;;  %v281_v13 = vpop.permute.xlu1 %280 }
  0x8e   : > { %v286_v18 = vpop.permute.xlu0 %285  ;;  %v276_v21 = vpop.permute.xlu1 %275 }
  0xd8   : > { %v386_v49 = vpop.f32.mrf.mxu0 }
  0xd9   : > { %v387_v26 = vadd.f32 %v386_v49, %v276_v21 }
  0xda   : > { %v388_v50 = vpop.f32.mrf.mxu0 }
  0xdb   : > { %v389_v30 = vadd.f32 %v388_v50, %v276_v21 }
  0xdc   : > { %v397_v51 = vpop.f32.mrf.mxu0 }
  0xdd   : > { %v398_v24 = vadd.f32 %v397_v51, %v281_v13  ;;  %v942_v51 = vsel %vm940_vm2, %v933_v38, 0 }
  0xde   : > { %v399_v52 = vpop.f32.mrf.mxu0 }
  0xdf   : > { %v400_v27 = vadd.f32 %v399_v52, %v281_v13 }
  0xe0   : > { %v408_v53 = vpop.f32.mrf.mxu0  ;;  %v501_v54 = vpop.f32.mrf.mxu1 }
  0xe1   : > { %v409_v25 = vadd.f32 %v408_v53, %v286_v18  ;;  %v502_v39 = vadd.f32 %v501_v54, %v387_v26 }
  0xe2   : > { %v410_v55 = vpop.f32.mrf.mxu0  ;;  %v503_v56 = vpop.f32.mrf.mxu1 }
  0xe3   : > { %v411_v36 = vadd.f32 %v410_v55, %v286_v18  ;;  %v504_v40 = vadd.f32 %v503_v56, %v389_v30 }
  0xe4   : > { %v419_v57 = vpop.f32.mrf.mxu0  ;;  %v508_v58 = vpop.f32.mrf.mxu1 }
  0xe5   : > { %v420_v34 = vadd.f32 %v419_v57, %v291_v10  ;;  %v509_v35 = vadd.f32 %v508_v58, %v398_v24 }
  0xe6   : > { %v421_v59 = vpop.f32.mrf.mxu0  ;;  %v510_v60 = vpop.f32.mrf.mxu1 }
  0xe7   : > { %v511_v31 = vadd.f32 %v510_v60, %v400_v27  ;;  %v422_v58 = vadd.f32 %v421_v59, %v291_v10  ;;  %v1828_v10 = vand.u32 4294901760, %v942_v51 }
  0xe8   : > { %v515_v61 = vpop.f32.mrf.mxu1  ;;  %v599_v62 = vpop.f32.mrf.mxu0 }
  0xe9   : > { %v516_v37 = vadd.f32 %v515_v61, %v409_v25  ;;  %v600_v47 = vadd.f32 %v599_v62, %v502_v39 }
  0xea   : > { %v517_v63 = vpop.f32.mrf.mxu1  ;;  %v601_v0 = vpop.f32.mrf.mxu0 }
  0xeb   : > { %v518_v43 = vadd.f32 %v517_v63, %v411_v36  ;;  %v602_v48 = vadd.f32 %v601_v0, %v504_v40 }
  0xec   : > { %v522_v1 = vpop.f32.mrf.mxu1  ;;  %v607_v3 = vpop.f32.mrf.mxu0 }
  0xed   : > { %v608_v44 = vadd.f32 %v607_v3, %v509_v35  ;;  %v523_v52 = vadd.f32 %v522_v1, %v420_v34 }
  0xee   : > { %v1821_v4 = vpop.f32.mrf.mxu1  ;;  %v609_v5 = vpop.f32.mrf.mxu0 }
  0xef   : > { %v610_v41 = vadd.f32 %v609_v5, %v511_v31  ;;  %v525_v62 = vadd.f32 %v1821_v4, %v422_v58 }
  0xf0   : > { %v615_v6 = vpop.f32.mrf.mxu0  ;;  %v699_v7 = vpop.f32.mrf.mxu1 }
  0xf1   : > { %v616_v45 = vadd.f32 %v615_v6, %v516_v37  ;;  %v700_v60 = vadd.f32 %v699_v7, %v600_v47 }
  0xf2   : > { %v617_v8 = vpop.f32.mrf.mxu0  ;;  %v701_v9 = vpop.f32.mrf.mxu1 }
  0xf3   : > { %v618_v53 = vadd.f32 %v617_v8, %v518_v43  ;;  %v702_v54 = vadd.f32 %v701_v9, %v602_v48 }
  0xf4   : > { %v623_v11 = vpop.f32.mrf.mxu0  ;;  %v708_v12 = vpop.f32.mrf.mxu1 }
  0xf5   : > { %v709_v55 = vadd.f32 %v708_v12, %v608_v44  ;;  %v624_v5 = vadd.f32 %v623_v11, %v523_v52 }
  0xf6   : > { %v625_v14 = vpop.f32.mrf.mxu0  ;;  %v710_v15 = vpop.f32.mrf.mxu1 }
  0xf7   : > { %v711_v49 = vadd.f32 %v710_v15, %v610_v41  ;;  %v626_v59 = vadd.f32 %v625_v14, %v525_v62  ;;  %v1831_v14 = vsub.f32 %v942_v51, %v1828_v10 }
  0xf8   : > { %v717_v16 = vpop.f32.mrf.mxu1  ;;  %v804_v17 = vpop.f32.mrf.mxu0 }
  0xf9   : > { %v718_v57 = vadd.f32 %v717_v16, %v616_v45  ;;  %v805_v0 = vadd.f32 %v804_v17, %v700_v60 }
  0xfa   : > { %v719_v19 = vpop.f32.mrf.mxu1  ;;  %v806_v20 = vpop.f32.mrf.mxu0 }
  0xfb   : > { %v720_v63 = vadd.f32 %v719_v19, %v618_v53  ;;  %v807_v15 = vadd.f32 %v806_v20, %v702_v54 }
  0xfc   : > { %v726_v22 = vpop.f32.mrf.mxu1  ;;  %v811_v23 = vpop.f32.mrf.mxu0 }
  0xfd   : > { %v812_v3 = vadd.f32 %v811_v23, %v709_v55  ;;  %v727_v1 = vadd.f32 %v726_v22, %v624_v5 }
  0xfe   : > { %v728_v28 = vpop.f32.mrf.mxu1  ;;  %v813_v29 = vpop.f32.mrf.mxu0 }
  0xff   : > { %v814_v56 = vadd.f32 %v813_v29, %v711_v49  ;;  %v729_v26 = vadd.f32 %v728_v28, %v626_v59 }
 0x100   : > { %v818_v32 = vpop.f32.mrf.mxu0  ;;  %v899_v33 = vpop.f32.mrf.mxu1 }
 0x101   : > { %v819_v6 = vadd.f32 %v818_v32, %v718_v57  ;;  %v900_v11 = vadd.f32 %v899_v33, %v805_v0 }
 0x102   : > { %v901_v42 = vpop.f32.mrf.mxu1  ;;  %v820_v46 = vpop.f32.mrf.mxu0 }
 0x103   : > { %v821_v8 = vadd.f32 %v820_v46, %v720_v63  ;;  %v902_v7 = vadd.f32 %v901_v42, %v807_v15  ;;  %v925_v32 = vmax.f32 %v900_v11, 0.0  ;;  %v1019_v42 = vand.u32 4294901760, %v1831_v14 }
 0x104   : > { %v906_v50 = vpop.f32.mrf.mxu1  ;;  %v825_v13 = vpop.f32.mrf.mxu0 }
 0x105   : > { %v907_v12 = vadd.f32 %v906_v50, %v812_v3  ;;  %v826_v19 = vadd.f32 %v825_v13, %v727_v1  ;;  %v926_v22 = vmax.f32 %v902_v7, 0.0  ;;  %v1849_v43 = vand.u32 4294901760, %v925_v32 }
 0x106   : > { %v908_v61 = vpop.f32.mrf.mxu1  ;;  %v827_v23 = vpop.f32.mrf.mxu0  ;;  %v1020_v52 = vsub.f32 %v1831_v14, %v1019_v42 }
 0x107   : > { %v909_v18 = vadd.f32 %v908_v61, %v814_v56  ;;  %v927_v20 = vmax.f32 %v907_v12, 0.0  ;;  %v828_v30 = vadd.f32 %v827_v23, %v729_v26  ;;  %v1843_v39 = vand.u32 4294901760, %v926_v22 }
 0x108   : > { %v913_v21 = vpop.f32.mrf.mxu1  ;;  %v1876_v55 = vsub.f32 %v925_v32, %v1849_v43  ;;  %v1021_v61 = vand.u32 4294901760, %v1020_v52 }
 0x109   : > { %v914_v16 = vadd.f32 %v913_v21, %v819_v6  ;;  %v928_v4 = vmax.f32 %v909_v18, 0.0  ;;  %v1839_v37 = vand.u32 4294901760, %v927_v20  ;;  %v1867_v50 = vsub.f32 %v926_v22, %v1843_v39 }
 0x10a   : > { %v915_v9 = vpop.f32.mrf.mxu1  ;;  %v1096_v6 = vand.u32 4294901760, %v1876_v55 }
 0x10b   : > { %v929_v24 = vmax.f32 %v914_v16, 0.0  ;;  %v916_v25 = vadd.f32 %v915_v9, %v821_v8  ;;  %v1837_v36 = vand.u32 4294901760, %v928_v4  ;;  %v1863_v48 = vsub.f32 %v927_v20, %v1839_v37 }
 0x10c   : > { %v920_v17 = vpop.f32.mrf.mxu1  ;;  %v1090_v3 = vand.u32 4294901760, %v1867_v50  ;;  %v1097_v8 = vsub.f32 %v1876_v55, %v1096_v6 }
 0x10d   : > { %v930_v27 = vmax.f32 %v916_v25, 0.0  ;;  %v921_v29 = vadd.f32 %v920_v17, %v826_v19  ;;  %v1833_v34 = vand.u32 4294901760, %v929_v24  ;;  %v1858_v46 = vsub.f32 %v928_v4, %v1837_v36 }
 0x10e   : > { %v922_v31 = vpop.f32.mrf.mxu1  ;;  %v1084_v54 = vand.u32 4294901760, %v1863_v48  ;;  %v1091_v1 = vsub.f32 %v1867_v50, %v1090_v3  ;;  %v1098_v9 = vand.u32 4294901760, %v1097_v8 }
 0x10f   : > { %v1835_v33 = vand.u32 4294901760, %v930_v27  ;;  %v931_v35 = vmax.f32 %v921_v29, 0.0  ;;  %v923_v28 = vadd.f32 %v922_v31, %v828_v30  ;;  %v1852_v44 = vsub.f32 %v929_v24, %v1833_v34  ;;  %v938_v24 = vpop.permute.xlu0 %937 }
 0x110   : > { %v1078_v60 = vand.u32 4294901760, %v1858_v46  ;;  %v1085_v15 = vsub.f32 %v1863_v48, %v1084_v54  ;;  %v1092_v7 = vand.u32 4294901760, %v1091_v1 }
 0x111   : > { %v1841_v38 = vand.u32 4294901760, %v931_v35  ;;  %v1846_v40 = vsub.f32 %v930_v27, %v1835_v33  ;;  %v932_v41 = vmax.f32 %v923_v28, 0.0  ;;  %v1072_v57 = vand.u32 4294901760, %v1852_v44 }
 0x112   : > { %v1079_v0 = vsub.f32 %v1858_v46, %v1078_v60  ;;  %v1086_v59 = vand.u32 4294901760, %v1085_v15 }
 0x113   : > { %v1855_v45 = vsub.f32 %v931_v35, %v1841_v38  ;;  %v1860_v47 = vand.u32 4294901760, %v932_v41  ;;  %v1066_v53 = vand.u32 4294901760, %v1846_v40  ;;  %v1073_v13 = vsub.f32 %v1852_v44, %v1072_v57 }
 0x114   : > { %v1080_v16 = vand.u32 4294901760, %v1079_v0 }
 0x115   : > { %v1060_v49 = vand.u32 4294901760, %v1855_v45  ;;  %v1053_v51 = vsub.f32 %v932_v41, %v1860_v47  ;;  %969 = vmatprep.subr.mxu0 %v1860_v47  ;;  %v1067_v63 = vsub.f32 %v1846_v40, %v1066_v53  ;;  %v1074_v12 = vand.u32 4294901760, %v1073_v13 }
 0x116   : > { %971 = vmatpush1.msra.mxu0 %v1841_v38 }
 0x117   : > { %973 = vmatprep.subr.mxu0 %v1835_v33  ;;  %v1054_v58 = vand.u32 4294901760, %v1053_v51  ;;  %v1061_v56 = vsub.f32 %v1855_v45, %v1060_v49  ;;  %v1068_v21 = vand.u32 4294901760, %v1067_v63 }
 0x118   : > { %975 = vmatpush1.msra.mxu0 %v1833_v34 }
 0x119   : > { %977 = vmatprep.subr.mxu0 %v1837_v36  ;;  %v1055_v5 = vsub.f32 %v1053_v51, %v1054_v58  ;;  %v1062_v18 = vand.u32 4294901760, %v1061_v56 }
 0x11a   : > { %979 = vmatpush1.msra.mxu0 %v1839_v37 }
 0x11b   : > { %981 = vmatprep.subr.mxu0 %v1843_v39  ;;  %v1056_v62 = vand.u32 4294901760, %v1055_v5 }
 0x11c   : > { %983 = vmatpush1.msra.mxu0 %v1849_v43 }
 0x11d   : > { %1022 = vmatmul.mubr.f32.vlgmr.msra.gmra.mxu0 %v1021_v61  ;;  %1057 = vmatprep.subr.mxu1 %v1056_v62 }
 0x11e   : > { %1166 = vmatprep.subr.mxu0 %v1053_v51  ;;  %1063 = vmatpush1.msra.mxu1 %v1062_v18 }
 0x11f   : > { %1169 = vmatpush1.msra.mxu0 %v1855_v45  ;;  %1069 = vmatprep.subr.mxu1 %v1068_v21 }
 0x120   : > { %1172 = vmatprep.subr.mxu0 %v1846_v40  ;;  %1075 = vmatpush1.msra.mxu1 %v1074_v12 }
 0x121   : > { %1175 = vmatpush1.msra.mxu0 %v1852_v44  ;;  %1081 = vmatprep.subr.mxu1 %v1080_v16 }
 0x122   : > { %1178 = vmatprep.subr.mxu0 %v1858_v46  ;;  %1087 = vmatpush1.msra.mxu1 %v1086_v59 }
 0x123   : > { %1181 = vmatpush1.msra.mxu0 %v1863_v48  ;;  %1093 = vmatprep.subr.mxu1 %v1092_v7 }
 0x124   : > { %1184 = vmatprep.subr.mxu0 %v1867_v50  ;;  %1099 = vmatpush1.msra.mxu1 %v1098_v9 }
 0x125   : > { %1187 = vmatpush1.msra.mxu0 %v1876_v55  ;;  %1134 = vmatmul.mubr.f32.vlgmr.msra.gmra.mxu1 %v1828_v10 }
 0x126   : > { %1220 = vmatprep.mubr.f32.mxu0 %v1660_v2  ;;  %1254 = vmatprep.subr.mxu1 %v1860_v47 }
 0x127   : > { %1338 = vmatprep.subr.mxu0 %v1054_v58  ;;  %1223 = vmatmul.mubr.f32.vlgmr.msra.gmra.mxu0 %v1831_v14 }
 0x128   : > { %1256 = vmatpush1.msra.mxu1 %v1841_v38  ;;  %1342 = vmatpush1.msra.mxu0 %v1060_v49 }
 0x129   : > { %1258 = vmatprep.subr.mxu1 %v1835_v33  ;;  %1346 = vmatprep.subr.mxu0 %v1066_v53 }
 0x12a   : > { %1260 = vmatpush1.msra.mxu1 %v1833_v34  ;;  %1350 = vmatpush1.msra.mxu0 %v1072_v57 }
 0x12b   : > { %1262 = vmatprep.subr.mxu1 %v1837_v36  ;;  %1354 = vmatprep.subr.mxu0 %v1078_v60 }
 0x12c   : > { %1264 = vmatpush1.msra.mxu1 %v1839_v37  ;;  %1358 = vmatpush1.msra.mxu0 %v1084_v54 }
 0x12d   : > { %1266 = vmatprep.subr.mxu1 %v1843_v39  ;;  %1362 = vmatprep.subr.mxu0 %v1090_v3 }
 0x12e   : > { %1268 = vmatpush1.msra.mxu1 %v1849_v43  ;;  %1301 = vmatprep.mubr.f32.mxu1 %v1660_v2 }
 0x12f   : > { %1366 = vmatpush1.msra.mxu0 %v1096_v6  ;;  %1305 = vmatmul.mubr.f32.vlgmr.msra.gmra.mxu1 %v1019_v42 }
 0x130   : > { %1432 = vmatprep.subr.mxu1 %v1860_v47  ;;  %1399 = vmatprep.mubr.f32.mxu0 %v1660_v2 }
 0x131   : > { %1434 = vmatpush1.msra.mxu1 %v1841_v38  ;;  %1401 = vmatmul.mubr.f32.vlgmr.msra.gmra.mxu0 %v1828_v10 }
 0x132   : > { %1436 = vmatprep.subr.mxu1 %v1835_v33  ;;  %1479 = vmatprep.mubr.f32.mxu1 %v1660_v2 }
 0x133   : > { %1438 = vmatpush1.msra.mxu1 %v1833_v34 }
 0x134   : > { %1440 = vmatprep.subr.mxu1 %v1837_v36 }
 0x135   : > { %1442 = vmatpush1.msra.mxu1 %v1839_v37 }
 0x136   : > { %1444 = vmatprep.subr.mxu1 %v1843_v39  ;;  %v1502_v39 = vld [vmem:[%s262_s27] sm:$0x77] }
 0x137   : > { %1446 = vmatpush1.msra.mxu1 %v1849_v43 }
 0x138   : > { %1481 = vmatmul.mubr.f32.vlgmr.msra.gmra.mxu1 %v1828_v10 }
 0x1dd   : > { %v1023_v11 = vpop.f32.mrf.mxu0 }
 0x1de   : > { %v1024_v4 = vadd.f32 %v1023_v11, %v938_v24 }
 0x1df   : > { %v1025_v23 = vpop.f32.mrf.mxu0 }
 0x1e0   : > { %v1026_v2 = vadd.f32 %v1025_v23, %v938_v24 }
 0x1e5   : > { %v1135_v19 = vpop.f32.mrf.mxu1 }
 0x1e6   : > { %v1136_v17 = vadd.f32 %v1135_v19, %v1024_v4 }
 0x1e7   : > { %v1137_v25 = vpop.f32.mrf.mxu1  ;;  %v1224_v26 = vpop.f32.mrf.mxu0 }
 0x1e8   : > { %v1138_v20 = vadd.f32 %v1137_v25, %v1026_v2  ;;  %v1225_v31 = vadd.f32 %v1224_v26, %v1136_v17 }
 0x1e9   : > { %v1226_v29 = vpop.f32.mrf.mxu0 }
 0x1ea   : > { %v1227_v14 = vadd.f32 %v1226_v29, %v1138_v20 }
 0x1ef   : > { %v1306_v27 = vpop.f32.mrf.mxu1 }
 0x1f0   : > { %v1307_v32 = vadd.f32 %v1306_v27, %v1225_v31 }
 0x1f1   : > { %v1308_v22 = vpop.f32.mrf.mxu1  ;;  %v1402_v30 = vpop.f32.mrf.mxu0 }
 0x1f2   : > { %v1309_v34 = vadd.f32 %v1308_v22, %v1227_v14  ;;  %v1403_v35 = vadd.f32 %v1402_v30, %v1307_v32 }
 0x1f3   : > { %v1404_v10 = vpop.f32.mrf.mxu0 }
 0x1f4   : > { %v1405_v36 = vadd.f32 %v1404_v10, %v1309_v34 }
 0x1f8   : > { %v1482_v33 = vpop.f32.mrf.mxu1 }
 0x1f9   : > { %v1483_v37 = vadd.f32 %v1482_v33, %v1403_v35 }
 0x1fa   : > { %v1484_v28 = vpop.f32.mrf.mxu1 }
 0x1fb   : > { %v1485_v38 = vadd.f32 %v1484_v28, %v1405_v36 }
 0x1fd   : > { %v1606_v40 = vpack.c.bf16 %v1485_v38, %v1483_v37 }
 0x1ff   : > { %v1503_v41 = vsel %vm1501_vm9, %v1606_v40, %v1502_v39 }
 0x200   : > { %1504 = vst [vmem:[%s262_s27] sm:$0x77] %v1503_v41 }
 0x201 PF: > { %s15_s20 = sadd.s32 1, %s1658_s20   ;;  %s1950_s18 = smov %s1654_s19 }
 0x202   : > { %p12_p5 = scmp.ge.s32.totalorder %s15_s20, 4   ;;  %s1951_s19 = smov %s1953_s21 }
 0x204   :  { %14 = sbr.rel (!%p12_p5) target bundleno = 2 (0x2), region = 70 }

</bundles_post_ra>
